<compile_context>
chip_gen: v5e
topology: v5e:2x2
jax: 0.10.0
libtpu: 0.0.40
codegen_flags: <defaults>
</compile_context>

<pallas_src>
import functools

import jax
import jax.numpy as jnp
from jax.experimental import pallas as pl
from jax.experimental.pallas import tpu as pltpu


def _round_up(a, b):
    return (a + b - 1) // b * b


def _vmem_capacity_bytes():
    # Generation-aware VMEM capacity (v7x: 64 MiB, v5e/v6e: 128 MiB).
    try:
        return int(pltpu.get_tpu_info().vmem_capacity_bytes)
    except Exception:
        return 64 << 20  # conservative default, safe on every generation


# ---------------------------------------------------------------------------
# Fused single-pass kernel: per-row mean -> attention -> scale.
# One HBM read + one HBM write of x, nothing else.
# ---------------------------------------------------------------------------
def _cbam_fused_kernel(x_ref, o_ref, *, inv_hw):
    # Block = (tr, HW); lane dim is the FULL spatial extent, so the row sum
    # never sees padded lanes.  Ragged row tiles: garbage rows stay in their
    # own rows (per-row reduction) and their writes are masked by Pallas.
    x = x_ref[...]
    s = jnp.sum(x, axis=-1, keepdims=True, dtype=jnp.float32)   # f32 accumulation
    m = s * inv_hw                                               # true mean (divide by real H*W)
    att = jax.nn.sigmoid(2.0 * jnp.maximum(m, 0.0))              # (tr, 1), f32
    o_ref[...] = x * att.astype(o_ref.dtype)                     # native-dtype multiply


# ---------------------------------------------------------------------------
# Two-pass fallback (only for spatial maps too large for a single row tile).
# ---------------------------------------------------------------------------
def _rowsum_kernel(x_ref, s_ref, *, hw, tc):
    k = pl.program_id(1)

    @pl.when(k == 0)
    def _():
        s_ref[...] = jnp.zeros_like(s_ref)

    x = x_ref[...]
    # Mask lanes beyond the true spatial extent in the ragged last column tile
    # (no host-side padding of HW).
    col = k * tc + jax.lax.broadcasted_iota(jnp.int32, x.shape, dimension=1)
    x = jnp.where(col < hw, x, jnp.zeros_like(x))
    s_ref[...] += jnp.sum(x, axis=-1, keepdims=True, dtype=jnp.float32)


def _scale_kernel(x_ref, att_ref, o_ref):
    o_ref[...] = x_ref[...] * att_ref[...].astype(o_ref.dtype)


def cbam_forward(x, *, block_bytes=None):
    """x: (N, C, H, W) -> (N, C, H, W), same as CBAM(channel).forward(x)."""
    N, C, H, W = x.shape
    HW = H * W
    R = N * C
    dtype = x.dtype
    itemsize = jnp.dtype(dtype).itemsize
    row_align = {4: 8, 2: 16, 1: 32}.get(itemsize, 8)
    inv_hw = 1.0 / float(HW)

    # ---- generation-aware budgets ------------------------------------------
    vmem_cap = _vmem_capacity_bytes()
    # Headroom for compiler-internal scratch: <= 48 MiB on v7x (64 MiB
    # physical), ~96 MiB on v5e/v6e (128 MiB physical).
    vmem_budget = max(32 << 20, min(vmem_cap - (16 << 20), 96 << 20))
    if block_bytes is None:
        # 2x input + 2x output double-buffered blocks (plus slack) must fit.
        block_bytes = max(1 << 20, min(vmem_budget // 5, 16 << 20))

    x2 = x.reshape(R, HW)                 # free metadata reshape (contiguous)
    hw_lane_vmem = _round_up(HW, 128)     # in-VMEM lane footprint per row

    flops = 3 * R * HW + 8 * R
    bytes_accessed = 2 * R * HW * itemsize

    if row_align * hw_lane_vmem * itemsize <= block_bytes:
        # ---- fused single pass: whole spatial extent per block, row-tiled --
        tr = (block_bytes // (hw_lane_vmem * itemsize)) // row_align * row_align
        # Keep >= 8 grid steps when R permits (v7x megacore + pipeline depth).
        tr = min(tr, _round_up(pl.cdiv(R, 8), row_align))
        tr = max(tr, row_align)
        if tr >= R:
            tr = R                        # full-extent row block (always legal)
        grid_r = pl.cdiv(R, tr)

        block_vmem = _round_up(tr, row_align) * hw_lane_vmem * itemsize
        vmem_limit = int(min(vmem_budget, max(5 * block_vmem, 32 << 20)))

        out2 = pl.pallas_call(
            functools.partial(_cbam_fused_kernel, inv_hw=inv_hw),
            out_shape=jax.ShapeDtypeStruct((R, HW), dtype),
            grid_spec=pltpu.PrefetchScalarGridSpec(
                num_scalar_prefetch=0,
                grid=(grid_r,),
                in_specs=[pl.BlockSpec((tr, HW), lambda i: (i, 0))],
                out_specs=pl.BlockSpec((tr, HW), lambda i: (i, 0)),
            ),
            compiler_params=pltpu.CompilerParams(
                dimension_semantics=("parallel",),
                vmem_limit_bytes=vmem_limit,
            ),
            cost_estimate=pl.CostEstimate(
                flops=flops, transcendentals=R, bytes_accessed=bytes_accessed),
        )(x2)
    else:
        # ---- two-pass fallback for very large spatial maps ------------------
        tr = row_align
        if tr >= R:
            tr = R
        tc = max(128, (block_bytes // (row_align * itemsize)) // 128 * 128)
        if tc >= HW:
            tc = HW                        # full-extent lane dim (always legal)
        grid_r = pl.cdiv(R, tr)
        grid_c = pl.cdiv(HW, tc)

        block_vmem = _round_up(tr, row_align) * _round_up(tc, 128) * itemsize
        vmem_limit = int(min(vmem_budget, max(5 * block_vmem, 32 << 20)))

        # pass 1: per-row f32 sums (output is O(R) bytes)
        sums = pl.pallas_call(
            functools.partial(_rowsum_kernel, hw=HW, tc=tc),
            out_shape=jax.ShapeDtypeStruct((R, 1), jnp.float32),
            grid_spec=pltpu.PrefetchScalarGridSpec(
                num_scalar_prefetch=0,
                grid=(grid_r, grid_c),
                in_specs=[pl.BlockSpec((tr, tc), lambda i, k: (i, k))],
                out_specs=pl.BlockSpec((tr, 1), lambda i, k: (i, 0)),
            ),
            compiler_params=pltpu.CompilerParams(
                dimension_semantics=("parallel", "arbitrary"),
                vmem_limit_bytes=vmem_limit,
            ),
            cost_estimate=pl.CostEstimate(
                flops=R * HW, transcendentals=0,
                bytes_accessed=R * HW * itemsize),
        )(x2)

        # per-row attention (tiny XLA op on R scalars)
        att = jax.nn.sigmoid(2.0 * jnp.maximum(sums * inv_hw, 0.0))

        # pass 2: purely elementwise scale at HBM roofline
        out2 = pl.pallas_call(
            _scale_kernel,
            out_shape=jax.ShapeDtypeStruct((R, HW), dtype),
            grid_spec=pltpu.PrefetchScalarGridSpec(
                num_scalar_prefetch=0,
                grid=(grid_r, grid_c),
                in_specs=[pl.BlockSpec((tr, tc), lambda i, k: (i, k)),
                          pl.BlockSpec((tr, 1), lambda i, k: (i, 0))],
                out_specs=pl.BlockSpec((tr, tc), lambda i, k: (i, k)),
            ),
            compiler_params=pltpu.CompilerParams(
                dimension_semantics=("parallel", "parallel"),
                vmem_limit_bytes=vmem_limit,
            ),
            cost_estimate=pl.CostEstimate(
                flops=R * HW, transcendentals=0,
                bytes_accessed=bytes_accessed),
        )(x2, att)

    return out2.reshape(N, C, H, W)


# TODO(synk): SpatialAttentionModule (2->1 channel 7x7 conv) exists in the
# PyTorch module but is never called by CBAM.forward, so it is intentionally
# not implemented.  The "shared_MLP" is just nn.ReLU() (no fc layers).


if __name__ == "__main__":
    key = jax.random.PRNGKey(0)
    k1, k2, k3 = jax.random.split(key, 3)

    def ref_cbam(x):
        m = jnp.mean(x, axis=(2, 3), keepdims=True)
        return jax.nn.sigmoid(2.0 * jnp.maximum(m, 0.0)).astype(x.dtype) * x

    fwd = jax.jit(cbam_forward)

    # 1) aligned shape (fused path)
    x1 = jax.random.normal(k1, (2, 4, 16, 16), dtype=jnp.float32)
    o1 = jax.block_until_ready(fwd(x1))
    assert o1.shape == x1.shape
    assert jnp.allclose(o1, ref_cbam(x1), atol=1e-5, rtol=1e-5)

    # 2) ragged rows + sub-128 lane extent (fused path, edge-block masking)
    x2 = jax.random.normal(k2, (2, 5, 7, 7), dtype=jnp.float32)
    o2 = jax.block_until_ready(fwd(x2))
    assert o2.shape == x2.shape
    assert jnp.allclose(o2, ref_cbam(x2), atol=1e-5, rtol=1e-5)

    # 3) force the two-pass fallback (tiny block budget) with ragged lane tiles
    x3 = jax.random.normal(k3, (2, 5, 16, 15), dtype=jnp.float32)
    fwd_fb = jax.jit(functools.partial(cbam_forward, block_bytes=4096))
    o3 = jax.block_until_ready(fwd_fb(x3))
    assert o3.shape == x3.shape
    assert jnp.allclose(o3, ref_cbam(x3), atol=1e-5, rtol=1e-5)

    print("KERNEL_OK")
</pallas_src>

<mosaic_0001>
module attributes {stable_mosaic.version = 11 : i64} {
  func.func @_cbam_fused_kernel(%arg0: i32, %arg1: memref<8x256xf32, #tpu.memory_space<vmem>>, %arg2: memref<8x256xf32, #tpu.memory_space<vmem>>) attributes {dimension_semantics = [#tpu.dimension_semantics<parallel>], iteration_bounds = array<i64: 1>, scalar_prefetch = 0 : i64, scratch_operands = 0 : i64, tpu.core_type = #tpu.core_type<tc>, window_params = [{transform_indices = @transform_0, window_bounds = array<i64: 8, 256>}, {transform_indices = @transform_1, window_bounds = array<i64: 8, 256>}]} {
    %c0 = arith.constant 0 : index
    %c0_0 = arith.constant 0 : index
    %0 = vector.load %arg1[%c0, %c0_0] : memref<8x256xf32, #tpu.memory_space<vmem>>, vector<8x256xf32>
    %cst = arith.constant dense<0.000000e+00> : vector<8xf32>
    %1 = vector.multi_reduction <add>, %0, %cst [1] : vector<8x256xf32> to vector<8xf32>
    %2 = vector.shape_cast %1 : vector<8xf32> to vector<8x1xf32>
    %cst_1 = arith.constant 3.906250e-03 : f32
    %3 = vector.broadcast %cst_1 : f32 to vector<8x1xf32>
    %4 = arith.mulf %2, %3 : vector<8x1xf32>
    %cst_2 = arith.constant 0.000000e+00 : f32
    %5 = vector.broadcast %cst_2 : f32 to vector<8x1xf32>
    %6 = arith.maximumf %4, %5 : vector<8x1xf32>
    %cst_3 = arith.constant 2.000000e+00 : f32
    %7 = vector.broadcast %cst_3 : f32 to vector<8x1xf32>
    %8 = arith.mulf %7, %6 : vector<8x1xf32>
    %9 = arith.negf %8 : vector<8x1xf32>
    %10 = math.exp %9 : vector<8x1xf32>
    %cst_4 = arith.constant 1.000000e+00 : f32
    %11 = vector.broadcast %cst_4 : f32 to vector<8x1xf32>
    %12 = arith.addf %11, %10 : vector<8x1xf32>
    %13 = arith.divf %11, %12 : vector<8x1xf32>
    %14 = vector.broadcast %13 : vector<8x1xf32> to vector<8x256xf32>
    %15 = arith.mulf %0, %14 : vector<8x256xf32>
    %c0_5 = arith.constant 0 : index
    %c0_6 = arith.constant 0 : index
    %16 = vector.load %arg2[%c0_5, %c0_6] : memref<8x256xf32, #tpu.memory_space<vmem>>, vector<8x256xf32>
    tpu.vector_store %arg2[%c0_5, %c0_6], %15 {strides = array<i32>} : memref<8x256xf32, #tpu.memory_space<vmem>>, vector<8x256xf32>,
    return
  }
  func.func @transform_0(%arg0: i32) -> (i32, i32) {
    %c0_i32 = arith.constant 0 : i32
    %c0_i32_0 = arith.constant 0 : i32
    return %arg0, %c0_i32 : i32, i32
  }
  func.func @transform_1(%arg0: i32) -> (i32, i32) {
    %c0_i32 = arith.constant 0 : i32
    %c0_i32_0 = arith.constant 0 : i32
    return %arg0, %c0_i32 : i32, i32
  }
}

</mosaic_0001>

<bundles_post_ra>
// kernel: cbam_forward.1
= control target key start
LH: loop header
LB: loop body
LE: loop exit
PB: predicated region body
PF: predicated region fallthrough
CT: control target
= control target key end

     0   :  { %s70_s0 = inlined_call_operand.vmem [shape: f32[8,256], index: 0, kind: input, shape index: {}]   ;;  %s71_s1 = inlined_call_operand.vmem [shape: f32[8,256], index: 1, kind: output, shape index: {}]  }
   0x1   :  { %v8_v0 = vld [vmem:[%s70_s0] sm:$0xff]  ;;  %v9_v1 = vld [vmem:[%s70_s0 + $0x8] sm:$0xff] }
   0x2   :  { %v10_v2 = vadd.f32 %v9_v1, %v8_v0 }
   0x4   :  { %11 = vadd.xlane.f32.xlu0 %v10_v2 }
  0x77   :  { %v12_v3 = vpop.xlane.xlu0 %11 }
  0x78   :  { %v13_v4 = vmul.f32 0.00390625, %v12_v3 }
  0x7a   :  { %v14_v5 = vmax.f32 %v13_v4, 0.0 }
  0x7c   :  { %v43_v6 = vmul.f32 -2.0, %v14_v5 }
  0x7e   :  { %v17_v7 = vmul.f32 1.442695, %v43_v6 }
  0x80   :  { %44 = vpow2.f32 %v17_v7 }
  0x86   :  { %v45_v8 = vpop.eup %44 }
  0x87   :  { %v19_v9 = vadd.f32 1.0, %v45_v8 }
  0x89   :  { %46 = vrcp.f32 %v19_v9  ;;  %v31_v13 = vand.u32 2147483648, %v19_v9  ;;  %v29_v15 = vand.u32 2147483647, %v19_v9  ;;  %vm25_vm1 = vweird.f32 %v19_v9 }
  0x8b   :  { %v32_v17 = vor.u32 1.1754944e-38, %v31_v13  ;;  %vm30_vm3 = vcmp.eq.f32.partialorder %v29_v15, 8.507059e+37 }
  0x8f   :  { %v47_v10 = vpop.eup %46 }
  0x90   :  { %v21_v11 = vmul.f32 %v47_v10, %v19_v9  ;;  %vm26_vm0 = vweird.f32 %v47_v10 }
  0x91   :  { %vm27_vm2 = vmor %vm25_vm1, %vm26_vm0 }
  0x92   :  { %v22_v12 = vsub.f32 1.0, %v21_v11 }
  0x94   :  { %v23_v14 = vmul.f32 %v47_v10, %v22_v12 }
  0x96   :  { %v24_v16 = vadd.f32 %v47_v10, %v23_v14 }
  0x98   :  { %v28_v18 = vsel %vm27_vm2, %v47_v10, %v24_v16 }
  0x99   :  { %v33_v19 = vsel %vm30_vm3, %v32_v17, %v28_v18 }
  0x9a   :  { %v35_v20 = vmul.f32 %v33_v19, %v8_v0  ;;  %v36_v21 = vmul.f32 %v33_v19, %v9_v1 }
  0x9c   :  { %37 = vst [vmem:[%s71_s1] sm:$0xff] %v35_v20 }
  0x9d   :  { %38 = vst [vmem:[%s71_s1 + $0x8] sm:$0xff] %v36_v21 }

</bundles_post_ra>
